<compile_context>
chip_gen: v5e
topology: v5e:2x2
jax: 0.10.0
libtpu: 0.0.40
codegen_flags: <defaults>
</compile_context>

<pallas_src>
import functools

import jax
import jax.numpy as jnp
from jax.experimental import pallas as pl
from jax.experimental.pallas import tpu as pltpu


# ----------------------------------------------------------------------------
# Pallas kernel: fused GCNConv + residual + MLP + softplus, packed layout
# ----------------------------------------------------------------------------
def gnn_actor_kernel(xp_ref, mg_ref, bg_ref, w1_ref, b1_ref, w2_ref, b2_ref,
                     w3_ref, b3_ref, out_ref, z1w_ref, *, act_dim, hidden):
    # xp_ref : (act_dim*C, G)   packed node features, graphs on lanes
    # mg_ref : (act_dim*C, act_dim*C) = kron(A_block, Wg^T)   (resident, ~2 KiB)
    # w1_ref : (act_dim*H, act_dim*C) = kron(I_act, W1^T)     (resident)
    # w2_ref : (H, H) = W2^T ; w3_ref : (H, 1) ; bg/b1/b2 are (rows, 1) columns
    # b3_ref : (1, 1) scalar in SMEM ; out_ref : (1, 1, act_dim*G)
    # z1w_ref: (H, act_dim*G) VMEM scratch (node blocks widened onto lanes)
    g = xp_ref.shape[1]

    xp = xp_ref[...]                                                  # load once
    # GCNConv (aggregation + weight fused into one 24x24 matmul) + bias + relu
    h = jnp.dot(mg_ref[...], xp, preferred_element_type=jnp.float32)  # (24, G)
    h = jnp.maximum(h + bg_ref[...], 0.0)
    z = h + xp                                                        # residual

    # lin1 (block-diagonal kron(I, W1^T)) + relu, still packed: (act*H, G)
    z1 = jnp.dot(w1_ref[...], z, preferred_element_type=jnp.float32)
    z1 = jnp.maximum(z1 + b1_ref[...], 0.0)

    # Widen node blocks onto the lane axis: (act*H, G) -> (H, act*G).
    # Sublane slices are 32-row aligned; lane offsets are multiples of 128.
    for n in range(act_dim):
        z1w_ref[:, n * g:(n + 1) * g] = (
            z1[n * hidden:(n + 1) * hidden, :].astype(z1w_ref.dtype))

    # lin2 + relu: ONE 32x32 matmul over all act_dim*G columns
    z2 = jnp.dot(w2_ref[...], z1w_ref[...],
                 preferred_element_type=jnp.float32)                  # (H, act*G)
    z2 = jnp.maximum(z2 + b2_ref[...], 0.0)

    # lin3 as VPU multiply + cross-sublane reduce (lane-dense (1, act*G) row)
    z3 = jnp.sum(z2 * w3_ref[...], axis=0, keepdims=True) + b3_ref[0, 0]

    # numerically stable single-exp softplus
    sp = jnp.maximum(z3, 0.0) + jnp.log1p(jnp.exp(-jnp.abs(z3)))

    out_ref[...] = (sp + 1e-20).reshape(out_ref.shape)


# ----------------------------------------------------------------------------
# Plain-JAX glue
# ----------------------------------------------------------------------------
def build_normalized_adjacency(edge_index, num_nodes):
    """Dense D^{-1/2}(A+I)D^{-1/2} for ONE graph; edge_index is (2, E) [src, dst]."""
    src, dst = edge_index[0], edge_index[1]
    A = jnp.zeros((num_nodes, num_nodes), jnp.float32)
    A = A.at[dst, src].add(1.0)                       # message src -> dst
    A = A + jnp.eye(num_nodes, dtype=jnp.float32)     # self loops
    deg = jnp.sum(A, axis=1)
    d_inv_sqrt = jnp.where(deg > 0, 1.0 / jnp.sqrt(deg), 0.0)
    return d_inv_sqrt[:, None] * A * d_inv_sqrt[None, :]


def init_params(key, in_channels, hidden_size):
    ks = jax.random.split(key, 8)
    scale = 0.1
    return dict(
        wg=scale * jax.random.normal(ks[0], (in_channels, in_channels), jnp.float32),
        bg=scale * jax.random.normal(ks[1], (in_channels,), jnp.float32),
        w1=scale * jax.random.normal(ks[2], (in_channels, hidden_size), jnp.float32),
        b1=scale * jax.random.normal(ks[3], (hidden_size,), jnp.float32),
        w2=scale * jax.random.normal(ks[4], (hidden_size, hidden_size), jnp.float32),
        b2=scale * jax.random.normal(ks[5], (hidden_size,), jnp.float32),
        w3=scale * jax.random.normal(ks[6], (hidden_size, 1), jnp.float32),
        b3=scale * jax.random.normal(ks[7], (1,), jnp.float32),
    )


def _round_up(x, m):
    return -(-x // m) * m


def _choose_tiling(batch, target_graphs=2048, lane=128):
    """Graphs per grid step (graphs live on the lane axis; multiple of 128).
    Small batches -> one 128-lane padded tile (unmasked stores, overhead-bound
    anyway).  Larger batches -> >= 2 roughly balanced 'parallel' tiles so v7x
    megacore can shard; ~2048 graphs/tile keeps per-step VMEM at ~5-6 MiB."""
    if batch <= lane:
        return lane, 1
    n_tiles = -(-batch // target_graphs)
    n_tiles = max(2, n_tiles + (n_tiles % 2))
    g_tile = _round_up(-(-batch // n_tiles), lane)
    n_tiles = -(-batch // g_tile)
    return g_tile, n_tiles


def gnn_actor_forward(state, edge_index, params, act_dim, deterministic=True,
                      mxu_dtype=jnp.float32):
    """state: (N, C) node features, N = batch * act_dim.
    edge_index: (2, E) edges of ONE act_dim-node graph (the batched graph is
    `batch` disjoint copies, giving a block-diagonal normalized adjacency).
    mxu_dtype: optionally bfloat16 on v6e/v7x to narrow the lin2 matmul operands
    (accumulation stays f32); default float32 for exact parity (keep f32 on v5e:
    no bf16 VPU and the kernel is not MXU-bound)."""
    N, C = state.shape
    batch = N // act_dim
    H = params["w1"].shape[1]
    P = act_dim * C

    g_tile, num_tiles = _choose_tiling(batch)
    padded_batch = g_tile * num_tiles

    # packed node features (act_dim*C sublanes, graphs on lanes), zero-padded
    xp = jnp.zeros((P, padded_batch), jnp.float32).at[:, :batch].set(
        state.reshape(batch, P).T.astype(jnp.float32))

    # fused GCN aggregation+weight (24x24) and block-diagonal lin1 (192x24);
    # adjacency / GCN accumulation stay in f32 for precision.
    a_block = build_normalized_adjacency(edge_index, act_dim)
    m_gcn = jnp.kron(a_block, params["wg"].T.astype(jnp.float32))          # (P, P)
    w1_p = jnp.kron(jnp.eye(act_dim, dtype=jnp.float32),
                    params["w1"].T.astype(jnp.float32))                    # (aH, P)
    bg_p = jnp.tile(params["bg"], act_dim).reshape(P, 1).astype(jnp.float32)
    b1_p = jnp.tile(params["b1"], act_dim).reshape(act_dim * H, 1).astype(jnp.float32)
    w2_t = params["w2"].T.astype(mxu_dtype)
    b2_c = params["b2"].reshape(H, 1).astype(jnp.float32)
    w3_c = params["w3"].reshape(H, 1).astype(jnp.float32)
    b3_s = params["b3"].reshape(1, 1).astype(jnp.float32)

    vmem = pl.BlockSpec(memory_space=pltpu.MemorySpace.VMEM)
    smem = pl.BlockSpec(memory_space=pltpu.MemorySpace.SMEM)

    kernel = functools.partial(gnn_actor_kernel, act_dim=act_dim, hidden=H)

    conc_tiles = pl.pallas_call(
        kernel,
        out_shape=jax.ShapeDtypeStruct((num_tiles, 1, act_dim * g_tile),
                                       jnp.float32),
        grid=(num_tiles,),
        in_specs=[
            pl.BlockSpec((P, g_tile), lambda i: (0, i)),   # packed feature tile
            vmem,                                          # kron(A_block, Wg^T)
            vmem,                                          # bg packed column
            vmem,                                          # kron(I, W1^T)
            vmem,                                          # b1 packed column
            vmem, vmem,                                    # W2^T, b2
            vmem,                                          # w3 column
            smem,                                          # b3 scalar
        ],
        out_specs=pl.BlockSpec((1, 1, act_dim * g_tile), lambda i: (i, 0, 0)),
        scratch_shapes=[pltpu.VMEM((H, act_dim * g_tile), mxu_dtype)],
        compiler_params=pltpu.CompilerParams(
            dimension_semantics=("parallel",)),
    )(xp, m_gcn, bg_p, w1_p, b1_p, w2_t, b2_c, w3_c, b3_s)

    # (tiles, act_dim, g_tile) -> (graphs, act_dim).  Padded graphs carry junk
    # concentrations (bias+softplus of zero features) and MUST be dropped here,
    # before the global normalization below.
    conc = conc_tiles.reshape(num_tiles, act_dim, g_tile)
    concentration = jnp.transpose(conc, (0, 2, 1)).reshape(
        padded_batch, act_dim)[:batch]

    if deterministic:
        # Matches the PyTorch reference exactly: `.sum()` reduces over ALL
        # elements (batch AND act_dim).
        action = concentration / (concentration.sum() + 1e-20)
        return action, None, concentration

    # TODO(synk): stochastic Dirichlet rsample / log_prob (gamma sampling) has no
    # clean Pallas equivalent; only the deterministic branch is implemented.
    raise NotImplementedError("stochastic Dirichlet sampling not implemented")


# ----------------------------------------------------------------------------
# Pure-JAX reference (row-major, dense block-diagonal adjacency) for checking
# ----------------------------------------------------------------------------
def reference_forward(state, edge_index, params, act_dim):
    N, C = state.shape
    batch = N // act_dim
    a_block = build_normalized_adjacency(edge_index, act_dim)
    A_full = jnp.kron(jnp.eye(batch, dtype=jnp.float32), a_block)
    h = jax.nn.relu(A_full @ (state @ params["wg"]) + params["bg"][None, :])
    z = h + state
    z1 = jax.nn.relu(z @ params["w1"] + params["b1"][None, :])
    z2 = jax.nn.relu(z1 @ params["w2"] + params["b2"][None, :])
    z3 = z2 @ params["w3"] + params["b3"][None, :]
    conc = (jax.nn.softplus(z3)[:, 0] + 1e-20).reshape(batch, act_dim)
    action = conc / (conc.sum() + 1e-20)
    return action, conc


# ----------------------------------------------------------------------------
if __name__ == "__main__":
    in_channels = 4
    hidden_size = 32
    act_dim = 6

    key = jax.random.PRNGKey(0)
    k_params, k1, k2, k3 = jax.random.split(key, 4)
    params = init_params(k_params, in_channels, hidden_size)

    # one act_dim-node bidirectional ring graph
    src = jnp.arange(act_dim, dtype=jnp.int32)
    dst = (src + 1) % act_dim
    edge_index = jnp.concatenate(
        [jnp.stack([src, dst], axis=0), jnp.stack([dst, src], axis=0)], axis=1)

    # batch=2   -> tiny single 128-lane padded tile
    # batch=100 -> single 128-lane tile
    # batch=300 -> two 256-graph "parallel" tiles (multi-tile / megacore path)
    for batch, k_state in ((2, k1), (100, k2), (300, k3)):
        N = batch * act_dim
        state = jax.random.normal(k_state, (N, in_channels), jnp.float32)

        action, log_prob, conc = gnn_actor_forward(
            state, edge_index, params, act_dim, deterministic=True)
        jax.block_until_ready(action)

        ref_action, ref_conc = reference_forward(state, edge_index, params, act_dim)

        assert action.shape == (batch, act_dim)
        assert conc.shape == (batch, act_dim)
        assert bool(jnp.all(conc > 0))
        assert bool(jnp.isfinite(action).all())
        assert bool(jnp.allclose(conc, ref_conc, rtol=1e-4, atol=1e-6)), "conc mismatch"
        assert bool(jnp.allclose(action, ref_action, rtol=1e-4, atol=1e-6)), "action mismatch"
        assert log_prob is None

    print("KERNEL_OK")
</pallas_src>

<mosaic_0001>
module attributes {stable_mosaic.version = 11 : i64} {
  func.func @gnn_actor_kernel(%arg0: i32, %arg1: memref<24x128xf32, #tpu.memory_space<vmem>>, %arg2: memref<24x24xf32, #tpu.memory_space<vmem>>, %arg3: memref<24x1xf32, #tpu.memory_space<vmem>>, %arg4: memref<192x24xf32, #tpu.memory_space<vmem>>, %arg5: memref<192x1xf32, #tpu.memory_space<vmem>>, %arg6: memref<32x32xf32, #tpu.memory_space<vmem>>, %arg7: memref<32x1xf32, #tpu.memory_space<vmem>>, %arg8: memref<32x1xf32, #tpu.memory_space<vmem>>, %arg9: memref<1x1xf32, #tpu.memory_space<smem>>, %arg10: memref<1x1x768xf32, #tpu.memory_space<vmem>>, %arg11: memref<32x768xf32, #tpu.memory_space<vmem>>) attributes {dimension_semantics = [#tpu.dimension_semantics<parallel>], iteration_bounds = array<i64: 1>, scalar_prefetch = 0 : i64, scratch_operands = 1 : i64, tpu.core_type = #tpu.core_type<tc>, window_params = [{transform_indices = @transform_0, window_bounds = array<i64: 24, 128>}, {pipeline_mode = #tpu.pipeline_mode<synchronous>, transform_indices = @transform_1, window_bounds = array<i64: 24, 24>}, {pipeline_mode = #tpu.pipeline_mode<synchronous>, transform_indices = @transform_2, window_bounds = array<i64: 24, 1>}, {pipeline_mode = #tpu.pipeline_mode<synchronous>, transform_indices = @transform_3, window_bounds = array<i64: 192, 24>}, {pipeline_mode = #tpu.pipeline_mode<synchronous>, transform_indices = @transform_4, window_bounds = array<i64: 192, 1>}, {pipeline_mode = #tpu.pipeline_mode<synchronous>, transform_indices = @transform_5, window_bounds = array<i64: 32, 32>}, {pipeline_mode = #tpu.pipeline_mode<synchronous>, transform_indices = @transform_6, window_bounds = array<i64: 32, 1>}, {pipeline_mode = #tpu.pipeline_mode<synchronous>, transform_indices = @transform_7, window_bounds = array<i64: 32, 1>}, {transform_indices = @transform_8, window_bounds = array<i64: 1, 1>}, {transform_indices = @transform_9, window_bounds = array<i64: 1, 1, 768>}]} {
    %c0 = arith.constant 0 : index
    %c0_0 = arith.constant 0 : index
    %0 = vector.load %arg1[%c0, %c0_0] : memref<24x128xf32, #tpu.memory_space<vmem>>, vector<24x128xf32>
    %c0_1 = arith.constant 0 : index
    %c0_2 = arith.constant 0 : index
    %1 = vector.load %arg2[%c0_1, %c0_2] : memref<24x24xf32, #tpu.memory_space<vmem>>, vector<24x24xf32>
    %cst = arith.constant dense<0.000000e+00> : vector<24x128xf32>
    %2 = tpu.matmul %1, %0, %cst {dimension_numbers = #tpu.dot_dimension_numbers<[1], [0], [0], [1], [0, 0, 1, 1], [], []>} : vector<24x24xf32>, vector<24x128xf32>, vector<24x128xf32> -> vector<24x128xf32>
    %c0_3 = arith.constant 0 : index
    %c0_4 = arith.constant 0 : index
    %3 = vector.load %arg3[%c0_3, %c0_4] : memref<24x1xf32, #tpu.memory_space<vmem>>, vector<24x1xf32>
    %4 = vector.broadcast %3 : vector<24x1xf32> to vector<24x128xf32>
    %5 = arith.addf %2, %4 : vector<24x128xf32>
    %cst_5 = arith.constant 0.000000e+00 : f32
    %6 = vector.broadcast %cst_5 : f32 to vector<24x128xf32>
    %7 = arith.maximumf %5, %6 : vector<24x128xf32>
    %8 = arith.addf %7, %0 : vector<24x128xf32>
    %c0_6 = arith.constant 0 : index
    %c0_7 = arith.constant 0 : index
    %9 = vector.load %arg4[%c0_6, %c0_7] : memref<192x24xf32, #tpu.memory_space<vmem>>, vector<192x24xf32>
    %cst_8 = arith.constant dense<0.000000e+00> : vector<192x128xf32>
    %10 = tpu.matmul %9, %8, %cst_8 {dimension_numbers = #tpu.dot_dimension_numbers<[1], [0], [0], [1], [0, 0, 1, 1], [], []>} : vector<192x24xf32>, vector<24x128xf32>, vector<192x128xf32> -> vector<192x128xf32>
    %c0_9 = arith.constant 0 : index
    %c0_10 = arith.constant 0 : index
    %11 = vector.load %arg5[%c0_9, %c0_10] : memref<192x1xf32, #tpu.memory_space<vmem>>, vector<192x1xf32>
    %12 = vector.broadcast %11 : vector<192x1xf32> to vector<192x128xf32>
    %13 = arith.addf %10, %12 : vector<192x128xf32>
    %cst_11 = arith.constant 0.000000e+00 : f32
    %14 = vector.broadcast %cst_11 : f32 to vector<192x128xf32>
    %15 = arith.maximumf %13, %14 : vector<192x128xf32>
    %16 = vector.extract_strided_slice %15 {offsets = [0, 0], sizes = [32, 128], strides = [1, 1]} : vector<192x128xf32> to vector<32x128xf32>
    %c0_12 = arith.constant 0 : index
    %c0_13 = arith.constant 0 : index
    %17 = vector.load %arg11[%c0_12, %c0_13] : memref<32x768xf32, #tpu.memory_space<vmem>>, vector<32x128xf32>
    tpu.vector_store %arg11[%c0_12, %c0_13], %16 {strides = array<i32>} : memref<32x768xf32, #tpu.memory_space<vmem>>, vector<32x128xf32>,
    %18 = vector.extract_strided_slice %15 {offsets = [32, 0], sizes = [32, 128], strides = [1, 1]} : vector<192x128xf32> to vector<32x128xf32>
    %c0_14 = arith.constant 0 : index
    %c128 = arith.constant 128 : index
    %19 = vector.load %arg11[%c0_14, %c128] : memref<32x768xf32, #tpu.memory_space<vmem>>, vector<32x128xf32>
    tpu.vector_store %arg11[%c0_14, %c128], %18 {strides = array<i32>} : memref<32x768xf32, #tpu.memory_space<vmem>>, vector<32x128xf32>,
    %20 = vector.extract_strided_slice %15 {offsets = [64, 0], sizes = [32, 128], strides = [1, 1]} : vector<192x128xf32> to vector<32x128xf32>
    %c0_15 = arith.constant 0 : index
    %c256 = arith.constant 256 : index
    %21 = vector.load %arg11[%c0_15, %c256] : memref<32x768xf32, #tpu.memory_space<vmem>>, vector<32x128xf32>
    tpu.vector_store %arg11[%c0_15, %c256], %20 {strides = array<i32>} : memref<32x768xf32, #tpu.memory_space<vmem>>, vector<32x128xf32>,
    %22 = vector.extract_strided_slice %15 {offsets = [96, 0], sizes = [32, 128], strides = [1, 1]} : vector<192x128xf32> to vector<32x128xf32>
    %c0_16 = arith.constant 0 : index
    %c384 = arith.constant 384 : index
    %23 = vector.load %arg11[%c0_16, %c384] : memref<32x768xf32, #tpu.memory_space<vmem>>, vector<32x128xf32>
    tpu.vector_store %arg11[%c0_16, %c384], %22 {strides = array<i32>} : memref<32x768xf32, #tpu.memory_space<vmem>>, vector<32x128xf32>,
    %24 = vector.extract_strided_slice %15 {offsets = [128, 0], sizes = [32, 128], strides = [1, 1]} : vector<192x128xf32> to vector<32x128xf32>
    %c0_17 = arith.constant 0 : index
    %c512 = arith.constant 512 : index
    %25 = vector.load %arg11[%c0_17, %c512] : memref<32x768xf32, #tpu.memory_space<vmem>>, vector<32x128xf32>
    tpu.vector_store %arg11[%c0_17, %c512], %24 {strides = array<i32>} : memref<32x768xf32, #tpu.memory_space<vmem>>, vector<32x128xf32>,
    %26 = vector.extract_strided_slice %15 {offsets = [160, 0], sizes = [32, 128], strides = [1, 1]} : vector<192x128xf32> to vector<32x128xf32>
    %c0_18 = arith.constant 0 : index
    %c640 = arith.constant 640 : index
    %27 = vector.load %arg11[%c0_18, %c640] : memref<32x768xf32, #tpu.memory_space<vmem>>, vector<32x128xf32>
    tpu.vector_store %arg11[%c0_18, %c640], %26 {strides = array<i32>} : memref<32x768xf32, #tpu.memory_space<vmem>>, vector<32x128xf32>,
    %c0_19 = arith.constant 0 : index
    %c0_20 = arith.constant 0 : index
    %28 = vector.load %arg6[%c0_19, %c0_20] : memref<32x32xf32, #tpu.memory_space<vmem>>, vector<32x32xf32>
    %c0_21 = arith.constant 0 : index
    %c0_22 = arith.constant 0 : index
    %29 = vector.load %arg11[%c0_21, %c0_22] : memref<32x768xf32, #tpu.memory_space<vmem>>, vector<32x768xf32>
    %cst_23 = arith.constant dense<0.000000e+00> : vector<32x768xf32>
    %30 = tpu.matmul %28, %29, %cst_23 {dimension_numbers = #tpu.dot_dimension_numbers<[1], [0], [0], [1], [0, 0, 1, 1], [], []>} : vector<32x32xf32>, vector<32x768xf32>, vector<32x768xf32> -> vector<32x768xf32>
    %c0_24 = arith.constant 0 : index
    %c0_25 = arith.constant 0 : index
    %31 = vector.load %arg7[%c0_24, %c0_25] : memref<32x1xf32, #tpu.memory_space<vmem>>, vector<32x1xf32>
    %32 = vector.broadcast %31 : vector<32x1xf32> to vector<32x768xf32>
    %33 = arith.addf %30, %32 : vector<32x768xf32>
    %cst_26 = arith.constant 0.000000e+00 : f32
    %34 = vector.broadcast %cst_26 : f32 to vector<32x768xf32>
    %35 = arith.maximumf %33, %34 : vector<32x768xf32>
    %c0_27 = arith.constant 0 : index
    %c0_28 = arith.constant 0 : index
    %36 = vector.load %arg8[%c0_27, %c0_28] : memref<32x1xf32, #tpu.memory_space<vmem>>, vector<32x1xf32>
    %37 = vector.broadcast %36 : vector<32x1xf32> to vector<32x768xf32>
    %38 = arith.mulf %35, %37 : vector<32x768xf32>
    %cst_29 = arith.constant dense<0.000000e+00> : vector<768xf32>
    %39 = vector.multi_reduction <add>, %38, %cst_29 [0] : vector<32x768xf32> to vector<768xf32>
    %40 = vector.shape_cast %39 : vector<768xf32> to vector<1x768xf32>
    %c0_30 = arith.constant 0 : index
    %c0_31 = arith.constant 0 : index
    %41 = memref.load %arg9[%c0_30, %c0_31] : memref<1x1xf32, #tpu.memory_space<smem>>
    %42 = vector.broadcast %41 : f32 to vector<1x768xf32>
    %43 = arith.addf %40, %42 : vector<1x768xf32>
    %cst_32 = arith.constant 0.000000e+00 : f32
    %44 = vector.broadcast %cst_32 : f32 to vector<1x768xf32>
    %45 = arith.maximumf %43, %44 : vector<1x768xf32>
    %46 = math.absf %43 : vector<1x768xf32>
    %cst_33 = arith.constant 0.000000e+00 : f32
    %47 = vector.broadcast %cst_33 : f32 to vector<1x768xf32>
    %48 = arith.subf %47, %46 : vector<1x768xf32>
    %49 = math.exp %48 : vector<1x768xf32>
    %50 = math.log1p %49 : vector<1x768xf32>
    %51 = arith.addf %45, %50 : vector<1x768xf32>
    %cst_34 = arith.constant 9.99999968E-21 : f32
    %52 = vector.broadcast %cst_34 : f32 to vector<1x768xf32>
    %53 = arith.addf %51, %52 : vector<1x768xf32>
    %54 = vector.shape_cast %53 : vector<1x768xf32> to vector<1x1x768xf32>
    %c0_35 = arith.constant 0 : index
    %c0_36 = arith.constant 0 : index
    %c0_37 = arith.constant 0 : index
    %55 = vector.load %arg10[%c0_35, %c0_36, %c0_37] : memref<1x1x768xf32, #tpu.memory_space<vmem>>, vector<1x1x768xf32>
    tpu.vector_store %arg10[%c0_35, %c0_36, %c0_37], %54 {strides = array<i32>} : memref<1x1x768xf32, #tpu.memory_space<vmem>>, vector<1x1x768xf32>,
    return
  }
  func.func @transform_0(%arg0: i32) -> (i32, i32) {
    %c0_i32 = arith.constant 0 : i32
    %c0_i32_0 = arith.constant 0 : i32
    return %c0_i32, %arg0 : i32, i32
  }
  func.func @transform_1(%arg0: i32) -> (i32, i32) {
    %c0_i32 = arith.constant 0 : i32
    %c0_i32_0 = arith.constant 0 : i32
    %c0_i32_1 = arith.constant 0 : i32
    return %c0_i32, %c0_i32_0 : i32, i32
  }
  func.func @transform_2(%arg0: i32) -> (i32, i32) {
    %c0_i32 = arith.constant 0 : i32
    %c0_i32_0 = arith.constant 0 : i32
    %c0_i32_1 = arith.constant 0 : i32
    return %c0_i32, %c0_i32_0 : i32, i32
  }
  func.func @transform_3(%arg0: i32) -> (i32, i32) {
    %c0_i32 = arith.constant 0 : i32
    %c0_i32_0 = arith.constant 0 : i32
    %c0_i32_1 = arith.constant 0 : i32
    return %c0_i32, %c0_i32_0 : i32, i32
  }
  func.func @transform_4(%arg0: i32) -> (i32, i32) {
    %c0_i32 = arith.constant 0 : i32
    %c0_i32_0 = arith.constant 0 : i32
    %c0_i32_1 = arith.constant 0 : i32
    return %c0_i32, %c0_i32_0 : i32, i32
  }
  func.func @transform_5(%arg0: i32) -> (i32, i32) {
    %c0_i32 = arith.constant 0 : i32
    %c0_i32_0 = arith.constant 0 : i32
    %c0_i32_1 = arith.constant 0 : i32
    return %c0_i32, %c0_i32_0 : i32, i32
  }
  func.func @transform_6(%arg0: i32) -> (i32, i32) {
    %c0_i32 = arith.constant 0 : i32
    %c0_i32_0 = arith.constant 0 : i32
    %c0_i32_1 = arith.constant 0 : i32
    return %c0_i32, %c0_i32_0 : i32, i32
  }
  func.func @transform_7(%arg0: i32) -> (i32, i32) {
    %c0_i32 = arith.constant 0 : i32
    %c0_i32_0 = arith.constant 0 : i32
    %c0_i32_1 = arith.constant 0 : i32
    return %c0_i32, %c0_i32_0 : i32, i32
  }
  func.func @transform_8(%arg0: i32) -> (i32, i32) {
    %c0_i32 = arith.constant 0 : i32
    %c0_i32_0 = arith.constant 0 : i32
    %c0_i32_1 = arith.constant 0 : i32
    return %c0_i32, %c0_i32_0 : i32, i32
  }
  func.func @transform_9(%arg0: i32) -> (i32, i32, i32) {
    %c0_i32 = arith.constant 0 : i32
    %c0_i32_0 = arith.constant 0 : i32
    %c0_i32_1 = arith.constant 0 : i32
    return %arg0, %c0_i32, %c0_i32_0 : i32, i32, i32
  }
}

</mosaic_0001>

<bundles_post_ra>
// kernel: tpu_custom_call.1
= control target key start
LH: loop header
LB: loop body
LE: loop exit
PB: predicated region body
PF: predicated region fallthrough
CT: control target
= control target key end

     0   :  { %v1104_v3 = vmov 0   ;;  %vm58_vm0 = vcmask 195584   ;;  %s1582_s0 = inlined_call_operand.vmem [shape: f32[24,128], index: 0, kind: input, shape index: {}]   ;;  %s1583_s1 = inlined_call_operand.vmem [shape: f32[24,24], index: 1, kind: input, shape index: {}]   ;;  %s1584_s2 = inlined_call_operand.vmem [shape: f32[24,1], index: 2, kind: input, shape index: {}]   ;;  %s1585_s3 = inlined_call_operand.vmem [shape: f32[192,24], index: 3, kind: input, shape index: {}]   ;;  %s1586_s4 = inlined_call_operand.vmem [shape: f32[192,1], index: 4, kind: input, shape index: {}]   ;;  %s1587_s5 = inlined_call_operand.vmem [shape: f32[32,32], index: 5, kind: input, shape index: {}]   ;;  %s1588_s6 = inlined_call_operand.vmem [shape: f32[32,1], index: 6, kind: input, shape index: {}]   ;;  %s1589_s7 = inlined_call_operand.vmem [shape: f32[32,1], index: 7, kind: input, shape index: {}]   ;;  %s1590_s8 = inlined_call_operand.<no memory space> [shape: f32[1,1], index: 8, kind: input, shape index: {}]   ;;  %s1591_s9 = inlined_call_operand.hbm [shape: f32[1,1,768], index: 9, kind: output, shape index: {}]  }
   0x1   :  { %v1159_v0 = vld [vmem:[%s1582_s0 + $0x10] sm:$0xff]  ;;  %v40_v2 = vld [vmem:[%s1584_s2] sm:$0xff]  ;;  %1052 = vset.pattern.permute.xlu1 %v1104_v3  ;;  %1051 = vset.pattern.permute.xlu0 %v1104_v3  ;;  %v1170_v4 = vld [vmem:[%s1582_s0 + $0x8] sm:$0xff] }
   0x2   :  { %v42_v1 = vld [vmem:[%s1584_s2 + $0x10] sm:$0xff]  ;;  %81 = vmatpush.msra.mxu0 %v1159_v0  ;;  %45 = vperm.xlu1 %1052, %v40_v2   ;;  %v1176_v5 = vld [vmem:[%s1582_s0] sm:$0xff] }
   0x3   :  { %55 = vperm.xlu0 %1051, %v42_v1   ;;  %1053 = vset.pattern.permute.xlu2 %v1104_v3  ;;  %v37_v6 = vld [vmem:[%s1583_s1] sm:$0xff] }
   0x4   :  { %82 = vmatpush.msra.mxu0 %v1170_v4 }
   0x5   :  { %15 = vsyncpa [#allocation5], 0  ;;  %v41_v7 = vld [vmem:[%s1584_s2 + $0x8] sm:$0xff]  ;;  %v127_v8 = vld [vmem:[%s1586_s4 + $0x18] sm:$0xff]  ;;  %vm529_vm1 = vcmask 261120   ;;  %vm957_vm8 = vcmask 1040384  }
   0x6   :  { %83 = vmatpush.msra.mxu0 %v1176_v5  ;;  %v38_v9 = vld [vmem:[%s1583_s1 + $0x8] sm:$0xff]  ;;  %v130_v10 = vld [vmem:[%s1586_s4 + $0x30] sm:$0xff]  ;;  %v124_v13 = vld [vmem:[%s1586_s4] sm:$0xff]  ;;  %vm961_vm9 = vcmask 1043459   ;;  %s980_s24 = sshll.u32 %s1591_s9, 4  ;;  %vm959_vm10 = vcmask 1041408   ;;  %s981_s24 = int_to_ptr.hbm [resolvable:$true] %s980_s24 }
   0x7   :  { %989 = vmatmul.msk.f32.vlgmr.msra.gmra.mxu0 %vm58_vm0, %v37_v6  ;;  %v125_v11 = vld [vmem:[%s1586_s4 + $0x8] sm:$0xff]  ;;  %v39_v12 = vld [vmem:[%s1583_s1 + $0x10] sm:$0xff]  ;;  %v128_v14 = vld [vmem:[%s1586_s4 + $0x20] sm:$0xff]  ;;  %vm963_vm11 = vcmask 1044483   ;;  %s1105_s25 = smov [#allocation4]   ;;  %vm965_vm12 = vcmask 1042432  }
   0x8   :  { %v134_v15 = vld [vmem:[%s1586_s4 + $0x50] sm:$0xff]  ;;  %v133_v16 = vld [vmem:[%s1586_s4 + $0x48] sm:$0xff]  ;;  %v139_v17 = vld [vmem:[%s1586_s4 + $0x78] sm:$0xff]  ;;  %s978_s26 = sshll.u32 %s1105_s25, 4  ;;  %s979_s26 = int_to_ptr.vmem [resolvable:$true] %s978_s26 }
   0x9   :  { %v143_v18 = vld [vmem:[%s1586_s4 + $0x98] sm:$0xff]  ;;  %v142_v19 = vld [vmem:[%s1586_s4 + $0x90] sm:$0xff]  ;;  %v137_v20 = vld [vmem:[%s1586_s4 + $0x68] sm:$0xff] }
   0xa   :  { %165 = vperm.xlu1 %1052, %v127_v8   ;;  %v136_v21 = vld [vmem:[%s1586_s4 + $0x60] sm:$0xff]  ;;  %v146_v23 = vld [vmem:[%s1586_s4 + $0xb0] sm:$0xff]  ;;  %v145_v24 = vld [vmem:[%s1586_s4 + $0xa8] sm:$0xff] }
   0xb   :  { %50 = vperm.xlu0 %1051, %v41_v7   ;;  %v140_v22 = vld [vmem:[%s1586_s4 + $0x80] sm:$0xff]  ;;  %v506_v26 = vld [vmem:[%s1588_s6 + $0x8] sm:$0xff]  ;;  %v508_v27 = vld [vmem:[%s1588_s6 + $0x18] sm:$0xff] }
   0xc   :  { %v505_v25 = vld [vmem:[%s1588_s6] sm:$0xff]  ;;  %v742_v29 = vld [vmem:[%s1589_s7 + $0x10] sm:$0xff]  ;;  %v743_v30 = vld [vmem:[%s1589_s7 + $0x18] sm:$0xff] }
   0xd   :  { %v740_v28 = vld [vmem:[%s1589_s7] sm:$0xff]  ;;  %v131_v31 = vld [vmem:[%s1586_s4 + $0x38] sm:$0xff]  ;;  %v126_v32 = vld [vmem:[%s1586_s4 + $0x10] sm:$0xff] }
   0xe   :  { %185 = vperm.xlu2 %1053, %v131_v31   ;;  %v129_v35 = vld [vmem:[%s1586_s4 + $0x28] sm:$0xff]  ;;  %v135_v38 = vld [vmem:[%s1586_s4 + $0x58] sm:$0xff]  ;;  %v100_v50 = vld [vmem:[%s1585_s3] sm:$0xff] }
   0xf   :  { %990 = vmatmul.msk.f32.gmra.mxu0 %vm58_vm0, %v38_v9  ;;  %v101_v51 = vld [vmem:[%s1585_s3 + $0x8] sm:$0xff]  ;;  %v114_v52 = vld [vmem:[%s1585_s3 + $0x70] sm:$0xff]  ;;  %v119_v53 = vld [vmem:[%s1585_s3 + $0x98] sm:$0xff] }
  0x10   :  { %v132_v54 = vld [vmem:[%s1586_s4 + $0x40] sm:$0xff]  ;;  %v102_v55 = vld [vmem:[%s1585_s3 + $0x10] sm:$0xff]  ;;  %v115_v56 = vld [vmem:[%s1585_s3 + $0x78] sm:$0xff] }
  0x11   :  { %v120_v57 = vld [vmem:[%s1585_s3 + $0xa0] sm:$0xff]  ;;  %v138_v58 = vld [vmem:[%s1586_s4 + $0x70] sm:$0xff]  ;;  %v103_v59 = vld [vmem:[%s1585_s3 + $0x18] sm:$0xff] }
  0x12   :  { %155 = vperm.xlu1 %1052, %v125_v11   ;;  %v116_v60 = vld [vmem:[%s1585_s3 + $0x80] sm:$0xff]  ;;  %v121_v61 = vld [vmem:[%s1585_s3 + $0xa8] sm:$0xff]  ;;  %v122_v1 = vld [vmem:[%s1585_s3 + $0xb0] sm:$0xff] }
  0x13   :  { %180 = vperm.xlu0 %1051, %v130_v10   ;;  %v141_v62 = vld [vmem:[%s1586_s4 + $0x88] sm:$0xff]  ;;  %v104_v63 = vld [vmem:[%s1585_s3 + $0x20] sm:$0xff]  ;;  %v147_v2 = vld [vmem:[%s1586_s4 + $0xb8] sm:$0xff] }
  0x14   :  { %v105_v3 = vld [vmem:[%s1585_s3 + $0x28] sm:$0xff]  ;;  %v144_v6 = vld [vmem:[%s1586_s4 + $0xa0] sm:$0xff]  ;;  %v106_v7 = vld [vmem:[%s1585_s3 + $0x30] sm:$0xff] }
  0x15   :  { %v507_v8 = vld [vmem:[%s1588_s6 + $0x10] sm:$0xff]  ;;  %v107_v9 = vld [vmem:[%s1585_s3 + $0x38] sm:$0xff]  ;;  %v741_v10 = vld [vmem:[%s1589_s7 + $0x8] sm:$0xff] }
  0x16   :  { %160 = vperm.xlu2 %1053, %v126_v32   ;;  %v108_v11 = vld [vmem:[%s1585_s3 + $0x40] sm:$0xff] }
  0x17   :  { %991 = vmatmul.msk.f32.gmra.mxu0 %vm58_vm0, %v39_v12  ;;  %v109_v12 = vld [vmem:[%s1585_s3 + $0x48] sm:$0xff] }
  0x1a   :  { %170 = vperm.xlu1 %1052, %v128_v14   ;;  %v111_v14 = vld [vmem:[%s1585_s3 + $0x58] sm:$0xff] }
  0x1b   :  { %150 = vperm.xlu0 %1051, %v124_v13   ;;  %v110_v13 = vld [vmem:[%s1585_s3 + $0x50] sm:$0xff] }
  0x1e   :  { %175 = vperm.xlu2 %1053, %v129_v35  }
  0x22   :  { %195 = vperm.xlu1 %1052, %v133_v16   ;;  %v113_v16 = vld [vmem:[%s1585_s3 + $0x68] sm:$0xff] }
  0x23   :  { %200 = vperm.xlu0 %1051, %v134_v15   ;;  %v112_v15 = vld [vmem:[%s1585_s3 + $0x60] sm:$0xff] }
  0x26   :  { %205 = vperm.xlu2 %1053, %v135_v38  }
  0x2a   :  { %245 = vperm.xlu1 %1052, %v143_v18  }
  0x2b   :  { %225 = vperm.xlu0 %1051, %v139_v17  }
  0x2e   :  { %190 = vperm.xlu2 %1053, %v132_v54  }
  0x32   :  { %215 = vperm.xlu1 %1052, %v137_v20  }
  0x33   :  { %240 = vperm.xlu0 %1051, %v142_v19  }
  0x36   :  { %220 = vperm.xlu2 %1053, %v138_v58  }
  0x3a   :  { %230 = vperm.xlu1 %1052, %v140_v22  }
  0x3b   :  { %210 = vperm.xlu0 %1051, %v136_v21  }
  0x3e   :  { %235 = vperm.xlu2 %1053, %v141_v62   ;;  %v1420_v62 = vld [vmem:[%s1587_s5 + $0x18] sm:$0xff] }
  0x42   :  { %255 = vperm.xlu1 %1052, %v145_v24  }
  0x43   :  { %260 = vperm.xlu0 %1051, %v146_v23  }
  0x46   :  { %265 = vperm.xlu2 %1053, %v147_v2  }
  0x4a   :  { %516 = vperm.xlu1 %1052, %v506_v26  }
  0x4b   :  { %511 = vperm.xlu0 %1051, %v505_v25  }
  0x4e   :  { %250 = vperm.xlu2 %1053, %v144_v6  }
  0x52   :  { %746 = vperm.xlu1 %1052, %v740_v28  }
  0x53   :  { %526 = vperm.xlu0 %1051, %v508_v27  }
  0x56   :  { %521 = vperm.xlu2 %1053, %v507_v8  }
  0x5a   :  { %761 = vperm.xlu1 %1052, %v743_v30  }
  0x5b   :  { %756 = vperm.xlu0 %1051, %v742_v29  }
  0x5e   :  { %751 = vperm.xlu2 %1053, %v741_v10  }
  0x68   :  { %v186_v17 = vpop.permute.xlu2 %185 }
  0x70   :  { %v161_v18 = vpop.permute.xlu2 %160 }
  0x74   :  { %v46_v40 = vpop.permute.xlu1 %45 }
  0x75   :  { %v56_v34 = vpop.permute.xlu0 %55 }
  0x78   :  { %v176_v20 = vpop.permute.xlu2 %175 }
  0x7c   :  { %v166_v21 = vpop.permute.xlu1 %165 }
  0x7d   :  { %v51_v37 = vpop.permute.xlu0 %50 }
  0x80   :  { %v1390_v24 = vpop.permute.xlu2 %205 }
  0x84   :  { %v85_v33 = vpop.f32.mrf.mxu0  ;;  %v156_v26 = vpop.permute.xlu1 %155 }
  0x85   :  { %v86_v42 = vadd.f32 %v85_v33, %v46_v40  ;;  %v181_v19 = vpop.permute.xlu0 %180 }
  0x87   :  { %v94_v46 = vmax.f32 %v86_v42, 0.0 }
  0x88   :  { %v1394_v29 = vpop.permute.xlu2 %190 }
  0x89   :  { %v97_v49 = vadd.f32 %v94_v46, %v1176_v5  ;;  %v123_v5 = vld [vmem:[%s1585_s3 + $0xb8] sm:$0xff] }
  0x8c   :  { %v88_v36 = vpop.f32.mrf.mxu0 }
  0x8d   :  { %v89_v39 = vadd.f32 %v88_v36, %v51_v37  ;;  %v151_v23 = vpop.permute.xlu0 %150  ;;  %v171_v36 = vpop.permute.xlu1 %170 }
  0x8f   :  { %v95_v44 = vmax.f32 %v89_v39, 0.0 }
  0x91   :  { %v98_v48 = vadd.f32 %v95_v44, %v1170_v4  ;;  %v118_v4 = vld [vmem:[%s1585_s3 + $0x90] sm:$0xff] }
  0x94   :  { %v91_v41 = vpop.f32.mrf.mxu0 }
  0x95   :  { %v92_v43 = vadd.f32 %v91_v41, %v56_v34  ;;  %v1392_v28 = vpop.permute.xlu0 %200  ;;  %v221_v41 = vpop.permute.xlu2 %220 }
  0x97   :  { %v96_v45 = vmax.f32 %v92_v43, 0.0 }
  0x99   :  { %v99_v47 = vadd.f32 %v96_v45, %v1159_v0  ;;  %v117_v0 = vld [vmem:[%s1585_s3 + $0x88] sm:$0xff] }
  0x9b   :  { %353 = vmatpush.msrb.mxu0 %v99_v47  ;;  %1040 = vmatpush.msra.mxu1 %v99_v47 }
  0x9c   :  { %1041 = vmatpush.msra.mxu2 %v99_v47  ;;  %1042 = vmatpush.msra.mxu3 %v99_v47  ;;  %v1399_v47 = vld [vmem:[%s1587_s5] sm:$0xff] }
  0x9d   :  { %354 = vmatpush.msrb.mxu0 %v98_v48  ;;  %1043 = vmatpush.msra.mxu1 %v98_v48  ;;  %v226_v40 = vpop.permute.xlu0 %225 }
  0x9e   :  { %1044 = vmatpush.msra.mxu2 %v98_v48  ;;  %1045 = vmatpush.msra.mxu3 %v98_v48 }
  0x9f   :  { %355 = vmatpush.msrb.mxu0 %v97_v49  ;;  %1046 = vmatpush.msra.mxu1 %v97_v49 }
  0xa0   :  { %1047 = vmatpush.msra.mxu2 %v97_v49  ;;  %1048 = vmatpush.msra.mxu3 %v97_v49 }
  0xa1   :  { %992 = vmatmul.msk.f32.vlgmr.msrb.gmra.mxu0 %vm58_vm0, %v100_v50  ;;  %993 = vmatmul.msk.f32.vlgmr.msra.gmra.mxu1 %vm58_vm0, %v101_v51  ;;  %v196_v50 = vpop.permute.xlu1 %195 }
  0xa2   :  { %1006 = vmatmul.msk.f32.vlgmr.msra.gmra.mxu2 %vm58_vm0, %v114_v52  ;;  %1011 = vmatmul.msk.f32.vlgmr.msra.gmra.mxu3 %vm58_vm0, %v119_v53  ;;  %v1406_v52 = vld [vmem:[%s1587_s5 + $0x8] sm:$0xff] }
  0xa9   :  { %994 = vmatmul.msk.f32.gmra.mxu1 %vm58_vm0, %v102_v55  ;;  %v246_v54 = vpop.permute.xlu1 %245 }
  0xaa   :  { %1007 = vmatmul.msk.f32.gmra.mxu2 %vm58_vm0, %v115_v56  ;;  %1012 = vmatmul.msk.f32.gmra.mxu3 %vm58_vm0, %v120_v57  ;;  %v1413_v56 = vld [vmem:[%s1587_s5 + $0x10] sm:$0xff] }
  0xb1   :  { %995 = vmatmul.msk.f32.gmra.mxu1 %vm58_vm0, %v103_v59 }
  0xb2   :  { %1008 = vmatmul.msk.f32.gmra.mxu2 %vm58_vm0, %v116_v60  ;;  %1013 = vmatmul.msk.f32.gmra.mxu3 %vm58_vm0, %v121_v61 }
  0xb9   :  { %996 = vmatmul.msk.f32.gmra.mxu1 %vm58_vm0, %v104_v63  ;;  %v1422_v63 = vpop.permute.xlu1 %215 }
  0xba   :  { %1009 = vmatmul.msk.f32.gmra.mxu2 %vm58_vm0, %v117_v0  ;;  %1014 = vmatmul.msk.f32.gmra.mxu3 %vm58_vm0, %v122_v1 }
  0xc1   :  { %997 = vmatmul.msk.f32.gmra.mxu1 %vm58_vm0, %v105_v3 }
  0xc2   :  { %1010 = vmatmul.msk.f32.gmra.mxu2 %vm58_vm0, %v118_v4  ;;  %1015 = vmatmul.msk.f32.gmra.mxu3 %vm58_vm0, %v123_v5  ;;  %v241_v5 = vpop.permute.xlu0 %240 }
  0xc9   :  { %998 = vmatmul.msk.f32.gmra.mxu1 %vm58_vm0, %v106_v7 }
  0xd1   :  { %999 = vmatmul.msk.f32.gmra.mxu1 %vm58_vm0, %v107_v9 }
  0xd9   :  { %1000 = vmatmul.msk.f32.gmra.mxu1 %vm58_vm0, %v108_v11 }
  0xe1   :  { %1001 = vmatmul.msk.f32.gmra.mxu1 %vm58_vm0, %v109_v12  ;;  %v236_v12 = vpop.permute.xlu2 %235 }
  0xe9   :  { %1002 = vmatmul.msk.f32.gmra.mxu1 %vm58_vm0, %v110_v13 }
  0xf1   :  { %1003 = vmatmul.msk.f32.gmra.mxu1 %vm58_vm0, %v111_v14 }
  0xf9   :  { %1004 = vmatmul.msk.f32.gmra.mxu1 %vm58_vm0, %v112_v15  ;;  %v231_v15 = vpop.permute.xlu1 %230 }
 0x101   :  { %1005 = vmatmul.msk.f32.gmra.mxu1 %vm58_vm0, %v113_v16 }
 0x11e   :  { %v360_v22 = vpop.f32.mrf.mxu1  ;;  %v357_v33 = vpop.f32.mrf.mxu0 }
 0x11f   :  { %v361_v34 = vadd.f32 %v360_v22, %v156_v26  ;;  %v358_v38 = vadd.f32 %v357_v33, %v151_v23 }
 0x121   :  { %v430_v42 = vmax.f32 %v361_v34, 0.0  ;;  %v429_v46 = vmax.f32 %v358_v38, 0.0 }
 0x125   :  { %v399_v27 = vpop.f32.mrf.mxu2  ;;  %v414_v58 = vpop.f32.mrf.mxu3 }
 0x126   :  { %v363_v25 = vpop.f32.mrf.mxu1  ;;  %v400_v43 = vadd.f32 %v399_v27, %v221_v41  ;;  %v415_v6 = vadd.f32 %v414_v58, %v246_v54 }
 0x127   :  { %v364_v31 = vadd.f32 %v363_v25, %v161_v18  ;;  %v211_v25 = vpop.permute.xlu0 %210 }
 0x128   :  { %v443_v48 = vmax.f32 %v400_v43, 0.0  ;;  %v448_v13 = vmax.f32 %v415_v6, 0.0 }
 0x129   :  { %v431_v39 = vmax.f32 %v364_v31, 0.0  ;;  %v266_v31 = vpop.permute.xlu2 %265 }
 0x12d   :  { %v402_v37 = vpop.f32.mrf.mxu2  ;;  %v417_v8 = vpop.f32.mrf.mxu3 }
 0x12e   :  { %v366_v30 = vpop.f32.mrf.mxu1  ;;  %v403_v44 = vadd.f32 %v402_v37, %v226_v40 }
 0x12f   :  { %v367_v32 = vadd.f32 %v366_v30, %v166_v21 }
 0x130   :  { %v444_v49 = vmax.f32 %v403_v44, 0.0 }
 0x131   :  { %v432_v35 = vmax.f32 %v367_v32, 0.0  ;;  %v251_v44 = vpop.permute.xlu2 %250 }
 0x133   :  { %554 = vmatpush.msrb.mxu2 %v432_v35 }
 0x135   :  { %555 = vmatpush.msrb.mxu2 %v431_v39  ;;  %v405_v53 = vpop.f32.mrf.mxu2  ;;  %v420_v21 = vpop.f32.mrf.mxu3 }
 0x136   :  { %v369_v45 = vpop.f32.mrf.mxu1  ;;  %v406_v16 = vadd.f32 %v405_v53, %v231_v15  ;;  %v261_v39 = vpop.permute.xlu0 %260 }
 0x137   :  { %556 = vmatpush.msrb.mxu2 %v430_v42  ;;  %v370_v2 = vadd.f32 %v369_v45, %v171_v36 }
 0x139   :  { %557 = vmatpush.msrb.mxu2 %v429_v46  ;;  %v433_v10 = vmax.f32 %v370_v2, 0.0  ;;  %v1474_v2 = vpop.permute.xlu2 %521 }
 0x13a   :  { %1016 = vmatmul.msk.f32.vlgmr.msrb.gmra.mxu2 %vm529_vm1, %v1399_v47 }
 0x13b   :  { %641 = vmatpush.msra.mxu2 %v444_v49 }
 0x13d   :  { %642 = vmatpush.msra.mxu2 %v443_v48  ;;  %v408_v57 = vpop.f32.mrf.mxu2  ;;  %v423_v23 = vpop.f32.mrf.mxu3 }
 0x13e   :  { %v372_v51 = vpop.f32.mrf.mxu1  ;;  %v409_v14 = vadd.f32 %v408_v57, %v236_v12  ;;  %v424_v41 = vadd.f32 %v423_v23, %v261_v39 }
 0x13f   :  { %v373_v0 = vadd.f32 %v372_v51, %v176_v20  ;;  %v445_v20 = vmax.f32 %v406_v16, 0.0 }
 0x140   :  { %v446_v18 = vmax.f32 %v409_v14, 0.0  ;;  %v451_v45 = vmax.f32 %v424_v41, 0.0 }
 0x141   :  { %v434_v7 = vmax.f32 %v373_v0, 0.0  ;;  %v1484_v12 = vpop.permute.xlu2 %751 }
 0x142   :  { %1017 = vmatmul.msk.f32.gmra.mxu2 %vm529_vm1, %v1406_v52 }
 0x145   :  { %v411_v4 = vpop.f32.mrf.mxu2  ;;  %v426_v34 = vpop.f32.mrf.mxu3 }
 0x146   :  { %v375_v55 = vpop.f32.mrf.mxu1  ;;  %v412_v11 = vadd.f32 %v411_v4, %v241_v5  ;;  %v427_v37 = vadd.f32 %v426_v34, %v266_v31 }
 0x147   :  { %v376_v60 = vadd.f32 %v375_v55, %v181_v19 }
 0x148   :  { %v452_v43 = vmax.f32 %v427_v37, 0.0 }
 0x149   :  { %v435_v3 = vmax.f32 %v376_v60, 0.0 }
 0x14a   :  { %1018 = vmatmul.msk.f32.gmra.mxu2 %vm529_vm1, %v1413_v56 }
 0x14e   :  { %v378_v59 = vpop.f32.mrf.mxu1 }
 0x14f   :  { %v379_v61 = vadd.f32 %v378_v59, %v186_v17  ;;  %v447_v17 = vmax.f32 %v412_v11, 0.0 }
 0x151   :  { %v436_v1 = vmax.f32 %v379_v61, 0.0  ;;  %v1470_v61 = vpop.permute.xlu0 %511 }
 0x152   :  { %1019 = vmatmul.msk.f32.gmra.mxu2 %vm529_vm1, %v1420_v62 }
 0x153   :  { %583 = vmatpush.msrb.mxu3 %v436_v1 }
 0x155   :  { %584 = vmatpush.msrb.mxu3 %v435_v3 }
 0x156   :  { %v381_v9 = vpop.f32.mrf.mxu1 }
 0x157   :  { %585 = vmatpush.msrb.mxu3 %v434_v7  ;;  %v382_v35 = vadd.f32 %v381_v9, %v1394_v29  ;;  %v418_v29 = vadd.f32 %v417_v8, %v251_v44 }
 0x159   :  { %586 = vmatpush.msrb.mxu3 %v433_v10  ;;  %v449_v49 = vmax.f32 %v418_v29, 0.0 }
 0x15a   :  { %1020 = vmatmul.msk.f32.vlgmr.msrb.gmra.mxu3 %vm529_vm1, %v1399_v47 }
 0x15b   :  { %670 = vmatpush.msra.mxu3 %v448_v13 }
 0x15d   :  { %671 = vmatpush.msra.mxu3 %v447_v17 }
 0x15e   :  { %v384_v19 = vpop.f32.mrf.mxu1 }
 0x15f   :  { %672 = vmatpush.msra.mxu3 %v446_v18  ;;  %v385_v32 = vadd.f32 %v384_v19, %v196_v50 }
 0x161   :  { %673 = vmatpush.msra.mxu3 %v445_v20  ;;  %v438_v38 = vmax.f32 %v385_v32, 0.0 }
 0x162   :  { %1021 = vmatmul.msk.f32.gmra.mxu3 %vm529_vm1, %v1406_v52 }
 0x166   :  { %v387_v22 = vpop.f32.mrf.mxu1 }
 0x167   :  { %v388_v27 = vadd.f32 %v387_v22, %v1392_v28  ;;  %v437_v28 = vmax.f32 %v382_v35, 0.0 }
 0x169   :  { %v439_v36 = vmax.f32 %v388_v27, 0.0 }
 0x16a   :  { %1022 = vmatmul.msk.f32.gmra.mxu3 %vm529_vm1, %v1413_v56 }
 0x16e   :  { %v390_v26 = vpop.f32.mrf.mxu1 }
 0x16f   :  { %v391_v30 = vadd.f32 %v390_v26, %v1390_v24  ;;  %v256_v24 = vpop.permute.xlu1 %255 }
 0x170   :  { %v421_v42 = vadd.f32 %v420_v21, %v256_v24 }
 0x171   :  { %v440_v33 = vmax.f32 %v391_v30, 0.0 }
 0x172   :  { %1023 = vmatmul.msk.f32.gmra.mxu3 %vm529_vm1, %v1420_v62  ;;  %v450_v46 = vmax.f32 %v421_v42, 0.0 }
 0x173   :  { %612 = vmatpush.msra.mxu0 %v440_v33 }
 0x175   :  { %613 = vmatpush.msra.mxu0 %v439_v36 }
 0x176   :  { %v393_v40 = vpop.f32.mrf.mxu1 }
 0x177   :  { %614 = vmatpush.msra.mxu0 %v438_v38  ;;  %v394_v50 = vadd.f32 %v393_v40, %v211_v25 }
 0x179   :  { %615 = vmatpush.msra.mxu0 %v437_v28  ;;  %v441_v54 = vmax.f32 %v394_v50, 0.0 }
 0x17a   :  { %1024 = vmatmul.msk.f32.vlgmr.msra.gmra.mxu0 %vm529_vm1, %v1399_v47  ;;  %1032 = vmatmul.msk.f32.vlgmr.msra.gmra.mxu3 %vm529_vm1, %v1399_v47 }
 0x17b   :  { %699 = vmatpush.msrb.mxu0 %v452_v43 }
 0x17d   :  { %700 = vmatpush.msrb.mxu0 %v451_v45 }
 0x17e   :  { %v396_v48 = vpop.f32.mrf.mxu1 }
 0x17f   :  { %v397_v51 = vadd.f32 %v396_v48, %v1422_v63  ;;  %701 = vmatpush.msrb.mxu0 %v450_v46 }
 0x181   :  { %v442_v53 = vmax.f32 %v397_v51, 0.0  ;;  %702 = vmatpush.msrb.mxu0 %v449_v49 }
 0x182   :  { %1025 = vmatmul.msk.f32.gmra.mxu0 %vm529_vm1, %v1406_v52  ;;  %1033 = vmatmul.msk.f32.gmra.mxu3 %vm529_vm1, %v1406_v52 }
 0x183   :  { %643 = vmatpush.msra.mxu2 %v442_v53 }
 0x185   :  { %644 = vmatpush.msra.mxu2 %v441_v54 }
 0x186   :  { %1028 = vmatmul.msk.f32.vlgmr.msra.gmra.mxu2 %vm529_vm1, %v1399_v47 }
 0x18a   :  { %1026 = vmatmul.msk.f32.gmra.mxu0 %vm529_vm1, %v1413_v56  ;;  %1034 = vmatmul.msk.f32.gmra.mxu3 %vm529_vm1, %v1413_v56 }
 0x18e   :  { %1029 = vmatmul.msk.f32.gmra.mxu2 %vm529_vm1, %v1406_v52 }
 0x192   :  { %1027 = vmatmul.msk.f32.gmra.mxu0 %vm529_vm1, %v1420_v62  ;;  %1035 = vmatmul.msk.f32.gmra.mxu3 %vm529_vm1, %v1420_v62 }
 0x196   :  { %1030 = vmatmul.msk.f32.gmra.mxu2 %vm529_vm1, %v1413_v56 }
 0x19a   :  { %1036 = vmatmul.msk.f32.vlgmr.msrb.gmra.mxu0 %vm529_vm1, %v1399_v47  ;;  %v1472_v47 = vpop.permute.xlu1 %516 }
 0x19e   :  { %1031 = vmatmul.msk.f32.gmra.mxu2 %vm529_vm1, %v1420_v62 }
 0x1a2   :  { %1037 = vmatmul.msk.f32.gmra.mxu0 %vm529_vm1, %v1406_v52  ;;  %v1476_v52 = vpop.permute.xlu0 %526 }
 0x1aa   :  { %1038 = vmatmul.msk.f32.gmra.mxu0 %vm529_vm1, %v1413_v56  ;;  %v1488_v17 = vpop.permute.xlu0 %756 }
 0x1b2   :  { %1039 = vmatmul.msk.f32.gmra.mxu0 %vm529_vm1, %v1420_v62  ;;  %v1479_v62 = vpop.permute.xlu1 %746 }
 0x1ba   :  { %v1495_v25 = vpop.permute.xlu1 %761 }
 0x1bd   :  { %v559_v57 = vpop.f32.mrf.mxu2 }
 0x1be   :  { %v560_v19 = vadd.f32 %v559_v57, %v1470_v61 }
 0x1c0   :  { %v716_v36 = vmax.f32 %v560_v19, 0.0 }
 0x1c2   :  { %v764_v46 = vmul.f32 %v1479_v62, %v716_v36 }
 0x1c5   :  { %v562_v59 = vpop.f32.mrf.mxu2 }
 0x1c6   :  { %v563_v13 = vadd.f32 %v562_v59, %v1472_v47 }
 0x1c8   :  { %v722_v30 = vmax.f32 %v563_v13, 0.0 }
 0x1ca   :  { %v770_v28 = vmul.f32 %v1484_v12, %v722_v30 }
 0x1cd   :  { %v565_v0 = vpop.f32.mrf.mxu2 }
 0x1ce   :  { %v566_v20 = vadd.f32 %v565_v0, %v1474_v2 }
 0x1d0   :  { %v728_v37 = vmax.f32 %v566_v20, 0.0 }
 0x1d2   :  { %v776_v48 = vmul.f32 %v1488_v17, %v728_v37 }
 0x1d5   :  { %v568_v7 = vpop.f32.mrf.mxu2 }
 0x1d6   :  { %v569_v31 = vadd.f32 %v568_v7, %v1476_v52 }
 0x1d8   :  { %v734_v24 = vmax.f32 %v569_v31, 0.0 }
 0x1da   :  { %v782_v57 = vmul.f32 %v1495_v25, %v734_v24 }
 0x1dd   :  { %v588_v55 = vpop.f32.mrf.mxu3 }
 0x1de   :  { %v589_v4 = vadd.f32 %v588_v55, %v1470_v61  ;;  %v788_v55 = vadd.f32 %v770_v28, %v764_v46 }
 0x1e0   :  { %v717_v10 = vmax.f32 %v589_v4, 0.0 }
 0x1e2   :  { %v765_v21 = vmul.f32 %v1479_v62, %v717_v10 }
 0x1e5   :  { %v591_v58 = vpop.f32.mrf.mxu3 }
 0x1e6   :  { %v592_v56 = vadd.f32 %v591_v58, %v1472_v47 }
 0x1e8   :  { %v723_v8 = vmax.f32 %v592_v56, 0.0  ;;  %v789_v56 = vadd.f32 %v788_v55, %v776_v48 }
 0x1ea   :  { %v771_v14 = vmul.f32 %v1484_v12, %v723_v8 }
 0x1ec   :  { %v797_v32 = vadd.f32 %v771_v14, %v765_v21 }
 0x1ed   :  { %v594_v60 = vpop.f32.mrf.mxu3 }
 0x1ee   :  { %v595_v5 = vadd.f32 %v594_v60, %v1474_v2 }
 0x1f0   :  { %v729_v11 = vmax.f32 %v595_v5, 0.0 }
 0x1f2   :  { %v777_v22 = vmul.f32 %v1488_v17, %v729_v11 }
 0x1f4   :  { %v798_v38 = vadd.f32 %v797_v32, %v777_v22 }
 0x1f5   :  { %v597_v63 = vpop.f32.mrf.mxu3 }
 0x1f6   :  { %v598_v9 = vadd.f32 %v597_v63, %v1476_v52 }
 0x1f7   :  { %v617_v1 = vpop.f32.mrf.mxu0 }
 0x1f8   :  { %v735_v15 = vmax.f32 %v598_v9, 0.0  ;;  %v618_v26 = vadd.f32 %v617_v1, %v1470_v61 }
 0x1fa   :  { %v783_v33 = vmul.f32 %v1495_v25, %v735_v15  ;;  %v718_v39 = vmax.f32 %v618_v26, 0.0 }
 0x1fc   :  { %v799_v42 = vadd.f32 %v798_v38, %v783_v33  ;;  %v766_v50 = vmul.f32 %v1479_v62, %v718_v39 }
 0x1fd   :  { %v675_v3 = vpop.f32.mrf.mxu3 }
 0x1fe   :  { %v676_v44 = vadd.f32 %v675_v3, %v1470_v61  ;;  %v800_v58 = vrot.slane %v799_v42, 4 }
 0x1ff   :  { %v620_v6 = vpop.f32.mrf.mxu0 }
 0x200   :  { %v621_v18 = vadd.f32 %v620_v6, %v1472_v47  ;;  %v720_v60 = vmax.f32 %v676_v44, 0.0  ;;  %v790_v6 = vadd.f32 %v789_v56, %v782_v57  ;;  %v801_v7 = vadd.f32 %v800_v58, %v799_v42 }
 0x202   :  { %v724_v35 = vmax.f32 %v621_v18, 0.0  ;;  %v768_v9 = vmul.f32 %v1479_v62, %v720_v60  ;;  %v791_v20 = vrot.slane %v790_v6, 4  ;;  %v802_v21 = vrot.slane %v801_v7, 2 }
 0x204   :  { %v772_v29 = vmul.f32 %v1484_v12, %v724_v35  ;;  %v792_v36 = vadd.f32 %v791_v20, %v790_v6  ;;  %v803_v37 = vadd.f32 %v802_v21, %v801_v7 }
 0x205   :  { %v678_v16 = vpop.f32.mrf.mxu3 }
 0x206   :  { %v679_v40 = vadd.f32 %v678_v16, %v1472_v47  ;;  %v806_v63 = vadd.f32 %v772_v29, %v766_v50  ;;  %v793_v42 = vrot.slane %v792_v36, 2 }
 0x207   :  { %v623_v23 = vpop.f32.mrf.mxu0 }
 0x208   :  { %v624_v27 = vadd.f32 %v623_v23, %v1474_v2  ;;  %v726_v51 = vmax.f32 %v679_v40, 0.0 }
 0x209   :  { %v646_v34 = vpop.f32.mrf.mxu2 }
 0x20a   :  { %v730_v41 = vmax.f32 %v624_v27, 0.0  ;;  %v774_v3 = vmul.f32 %v1484_v12, %v726_v51  ;;  %v647_v22 = vadd.f32 %v646_v34, %v1470_v61 }
 0x20c   :  { %v778_v53 = vmul.f32 %v1488_v17, %v730_v41  ;;  %v824_v15 = vadd.f32 %v774_v3, %v768_v9  ;;  %v719_v38 = vmax.f32 %v647_v22, 0.0 }
 0x20d   :  { %v681_v43 = vpop.f32.mrf.mxu3 }
 0x20e   :  { %v682_v45 = vadd.f32 %v681_v43, %v1474_v2  ;;  %v807_v4 = vadd.f32 %v806_v63, %v778_v53  ;;  %v804_v43 = vrot.slane %v803_v37, 1  ;;  %v767_v29 = vmul.f32 %v1479_v62, %v719_v38 }
 0x20f   :  { %v626_v49 = vpop.f32.mrf.mxu0 }
 0x210   :  { %v627_v54 = vadd.f32 %v626_v49, %v1476_v52  ;;  %v732_v0 = vmax.f32 %v682_v45, 0.0  ;;  %v805_v55 = vadd.f32 %v804_v43, %v803_v37 }
 0x211   :  { %v649_v59 = vpop.f32.mrf.mxu2 }
 0x212   :  { %v736_v1 = vmax.f32 %v627_v54, 0.0  ;;  %v780_v10 = vmul.f32 %v1488_v17, %v732_v0  ;;  %v650_v18 = vadd.f32 %v649_v59, %v1472_v47  ;;  %v794_v54 = vadd.f32 %v793_v42, %v792_v36 }
 0x214   :  { %v784_v5 = vmul.f32 %v1495_v25, %v736_v1  ;;  %v825_v26 = vadd.f32 %v824_v15, %v780_v10  ;;  %v725_v33 = vmax.f32 %v650_v18, 0.0 }
 0x215   :  { %v684_v8 = vpop.f32.mrf.mxu3 }
 0x216   :  { %v808_v11 = vadd.f32 %v807_v4, %v784_v5  ;;  %v685_v13 = vadd.f32 %v684_v8, %v1476_v52  ;;  %v773_v24 = vmul.f32 %v1484_v12, %v725_v33  ;;  %v795_v4 = vrot.slane %v794_v54, 1 }
 0x217   :  { %v704_v14 = vpop.f32.mrf.mxu0  ;;  %v843_v5 = vstv %s1590_s8 }
 0x218   :  { %v809_v16 = vrot.slane %v808_v11, 4  ;;  %v738_v19 = vmax.f32 %v685_v13, 0.0  ;;  %v815_v50 = vadd.f32 %v773_v24, %v767_v29  ;;  %v705_v63 = vadd.f32 %v704_v14, %v1470_v61 }
 0x219   :  { %v652_v23 = vpop.f32.mrf.mxu2  ;;  %v1532_v7 = vadd.f32 %v843_v5, %v805_v55  ;;  %v796_v13 = vadd.f32 %v795_v4, %v794_v54 }
 0x21a   :  { %v810_v27 = vadd.f32 %v809_v16, %v808_v11  ;;  %v786_v30 = vmul.f32 %v1495_v25, %v738_v19  ;;  %v653_v31 = vadd.f32 %v652_v23, %v1474_v2 }
 0x21c   :  { %v811_v32 = vrot.slane %v810_v27, 2  ;;  %v826_v35 = vadd.f32 %v825_v26, %v786_v30  ;;  %v731_v40 = vmax.f32 %v653_v31, 0.0  ;;  %v1544_v26 = vadd.f32 %v843_v5, %v796_v13 }
 0x21e   :  { %v827_v39 = vrot.slane %v826_v35, 4  ;;  %v812_v28 = vadd.f32 %v811_v32, %v810_v27  ;;  %v779_v46 = vmul.f32 %v1488_v17, %v731_v40  ;;  %v856_v37 = vand.u32 2147483647, %v1544_v26 }
 0x21f   :  { %v707_v41 = vpop.f32.mrf.mxu0 }
 0x220   :  { %v828_v34 = vadd.f32 %v827_v39, %v826_v35  ;;  %v813_v49 = vrot.slane %v812_v28, 1  ;;  %v816_v58 = vadd.f32 %v815_v50, %v779_v46  ;;  %v708_v59 = vadd.f32 %v707_v41, %v1472_v47 }
 0x221   :  { %v655_v44 = vpop.f32.mrf.mxu2  ;;  %v721_v47 = vmax.f32 %v705_v63, 0.0  ;;  %v862_v24 = vsub.f32 0.0, %v856_v37 }
 0x222   :  { %v829_v45 = vrot.slane %v828_v34, 2  ;;  %v656_v48 = vadd.f32 %v655_v44, %v1476_v52  ;;  %v814_v1 = vadd.f32 %v813_v49, %v812_v28  ;;  %v727_v8 = vmax.f32 %v708_v59, 0.0 }
 0x223   :  { %v769_v18 = vmul.f32 %v1479_v62, %v721_v47 }
 0x224   :  { %v830_v51 = vadd.f32 %v829_v45, %v828_v34  ;;  %v737_v53 = vmax.f32 %v656_v48, 0.0  ;;  %v1534_v10 = vadd.f32 %v843_v5, %v814_v1  ;;  %v775_v15 = vmul.f32 %v1484_v12, %v727_v8 }
 0x226   :  { %v831_v57 = vrot.slane %v830_v51, 1  ;;  %v785_v60 = vmul.f32 %v1495_v25, %v737_v53  ;;  %v858_v20 = vand.u32 2147483647, %v1534_v10  ;;  %v833_v31 = vadd.f32 %v775_v15, %v769_v18 }
 0x227   :  { %v710_v0 = vpop.f32.mrf.mxu0 }
 0x228   :  { %v817_v56 = vadd.f32 %v816_v58, %v785_v60  ;;  %v711_v3 = vadd.f32 %v710_v0, %v1474_v2  ;;  %v832_v6 = vadd.f32 %v831_v57, %v830_v51  ;;  %v857_v2 = vand.u32 2147483647, %v1532_v7 }
 0x229   :  { %v864_v12 = vsub.f32 0.0, %v858_v20 }
 0x22a   :  { %v818_v9 = vrot.slane %v817_v56, 4  ;;  %v733_v61 = vmax.f32 %v711_v3, 0.0  ;;  %v1536_v14 = vadd.f32 %v843_v5, %v832_v6  ;;  %v863_v30 = vsub.f32 0.0, %v857_v2 }
 0x22b   :  { %v872_v40 = vmul.f32 1.442695, %v864_v12 }
 0x22c   :  { %v819_v11 = vadd.f32 %v818_v9, %v817_v56  ;;  %v781_v22 = vmul.f32 %v1488_v17, %v733_v61  ;;  %v860_v27 = vand.u32 2147483647, %v1536_v14  ;;  %v870_v39 = vmul.f32 1.442695, %v863_v30 }
 0x22e   :  { %v820_v16 = vrot.slane %v819_v11, 2  ;;  %v834_v36 = vadd.f32 %v833_v31, %v781_v22  ;;  %v866_v38 = vsub.f32 0.0, %v860_v27  ;;  %1054 = vpow2.f32 %v870_v39 }
 0x22f   :  { %v713_v19 = vpop.f32.mrf.mxu0  ;;  %1056 = vpow2.f32 %v872_v40 }
 0x230   :  { %v821_v21 = vadd.f32 %v820_v16, %v819_v11  ;;  %v714_v23 = vadd.f32 %v713_v19, %v1476_v52  ;;  %v876_v34 = vmul.f32 1.442695, %v866_v38 }
 0x232   :  { %v822_v32 = vrot.slane %v821_v21, 1  ;;  %v739_v33 = vmax.f32 %v714_v23, 0.0  ;;  %1058 = vpow2.f32 %v876_v34  ;;  %v851_v34 = vmax.f32 %v1532_v7, 0.0 }
 0x234   :  { %v823_v35 = vadd.f32 %v822_v32, %v821_v21  ;;  %v787_v62 = vmul.f32 %v1495_v25, %v739_v33  ;;  %v868_v25 = vmul.f32 1.442695, %v862_v24  ;;  %v1055_v46 = vpop.eup %1054 }
 0x235   :  { %v1057_v49 = vpop.eup %1056  ;;  %v889_v53 = vadd.f32 1.0, %v1055_v46  ;;  %v892_v3 = vmul.f32 -0.5, %v1055_v46  ;;  %v895_v2 = vand.u32 2147483647, %v1055_v46 }
 0x236   :  { %v1549_v17 = vadd.f32 %v843_v5, %v823_v35  ;;  %v835_v52 = vadd.f32 %v834_v36, %v787_v62  ;;  %v898_v57 = vadd.f32 1.0, %v1057_v49  ;;  %v901_v6 = vmul.f32 -0.5, %v1057_v49 }
 0x237   :  { %v893_v11 = vadd.f32 1.0, %v892_v3  ;;  %v904_v21 = vand.u32 2147483647, %v1057_v49  ;;  %vm1555_vm2 = vcmp.lt.f32.partialorder %v895_v2, 0.0004427343 }
 0x238   :  { %v859_v41 = vand.u32 2147483647, %v1549_v17  ;;  %v836_v28 = vrot.slane %v835_v52, 4  ;;  %v1059_v51 = vpop.eup %1058  ;;  %v902_v19 = vadd.f32 1.0, %v901_v6 }
 0x239   :  { %v916_v60 = vadd.f32 1.0, %v1059_v51  ;;  %v894_v31 = vmul.f32 %v1055_v46, %v893_v11  ;;  %v922_v33 = vand.u32 2147483647, %v1059_v51  ;;  %vm1565_vm4 = vcmp.lt.f32.partialorder %v904_v21, 0.0004427343 }
 0x23a   :  { %v865_v42 = vsub.f32 0.0, %v859_v41  ;;  %v837_v43 = vadd.f32 %v836_v28, %v835_v52  ;;  %v903_v39 = vmul.f32 %v1057_v49, %v902_v19 }
 0x23b   :  { %vm923_vm5 = vcmp.lt.f32.partialorder %v922_v33, 0.0004427343 }
 0x23c   :  { %v874_v44 = vmul.f32 1.442695, %v865_v42  ;;  %v838_v29 = vrot.slane %v837_v43, 2  ;;  %v853_v42 = vmax.f32 %v1549_v17, 0.0  ;;  %v850_v17 = vmax.f32 %v1544_v26, 0.0 }
 0x23e   :  { %1060 = vpow2.f32 %v874_v44  ;;  %v839_v45 = vadd.f32 %v838_v29, %v837_v43  ;;  %v852_v44 = vmax.f32 %v1534_v10, 0.0 }
 0x23f   :  { %1062 = vpow2.f32 %v868_v25 }
 0x240   :  { %v840_v48 = vrot.slane %v839_v45, 1  ;;  %1064 = vlog2.f32 %v889_v53 }
 0x242   :  { %v841_v50 = vadd.f32 %v840_v48, %v839_v45  ;;  %v854_v45 = vmax.f32 %v1536_v14, 0.0 }
 0x244   :  { %v1061_v54 = vpop.eup %1060  ;;  %v1552_v55 = vadd.f32 %v843_v5, %v841_v50  ;;  %v919_v5 = vmul.f32 -0.5, %v1059_v51 }
 0x245   :  { %v907_v58 = vadd.f32 1.0, %v1061_v54  ;;  %v1063_v63 = vpop.eup %1062  ;;  %v910_v4 = vmul.f32 -0.5, %v1061_v54  ;;  %v913_v20 = vand.u32 2147483647, %v1061_v54 }
 0x246   :  { %v861_v59 = vand.u32 2147483647, %v1552_v55  ;;  %v880_v56 = vadd.f32 1.0, %v1063_v63  ;;  %v1065_v8 = vpop.eup %1064  ;;  %v883_v47 = vmul.f32 -0.5, %v1063_v63  ;;  %v886_v13 = vand.u32 2147483647, %v1063_v63 }
 0x247   :  { %1066 = vlog2.f32 %v907_v58  ;;  %v911_v15 = vadd.f32 1.0, %v910_v4  ;;  %v891_v18 = vmul.f32 0.6931472, %v1065_v8  ;;  %v920_v23 = vadd.f32 1.0, %v919_v5 }
 0x248   :  { %v867_v0 = vsub.f32 0.0, %v861_v59  ;;  %1068 = vlog2.f32 %v898_v57  ;;  %v884_v30 = vadd.f32 1.0, %v883_v47  ;;  %vm1561_vm3 = vcmp.lt.f32.partialorder %v913_v20, 0.0004427343 }
 0x249   :  { %1070 = vlog2.f32 %v916_v60  ;;  %v912_v35 = vmul.f32 %v1061_v54, %v911_v15  ;;  %v897_v38 = vsel %vm1555_vm2, %v894_v31, %v891_v18  ;;  %v921_v24 = vmul.f32 %v1059_v51, %v920_v23 }
 0x24a   :  { %v878_v1 = vmul.f32 1.442695, %v867_v0  ;;  %v935_v48 = vadd.f32 %v897_v38, %v851_v34  ;;  %v885_v50 = vmul.f32 %v1063_v63, %v884_v30  ;;  %vm887_vm6 = vcmp.lt.f32.partialorder %v886_v13, 0.0004427343 }
 0x24b   :  { %v855_v0 = vmax.f32 %v1552_v55, 0.0  ;;  %v968_v8 = vlaneseq }
 0x24c   :  { %1072 = vpow2.f32 %v878_v1  ;;  %v941_v60 = vadd.f32 1e-20, %v935_v48 }
 0x24d   :  { %v1067_v9 = vpop.eup %1066  ;;  %1074 = vlog2.f32 %v880_v56  ;;  %vm970_vm13 = vcmp.lt.s32.totalorder %v968_v8, 768 }
 0x24e   :  { %v1069_v61 = vpop.eup %1068  ;;  %v909_v22 = vmul.f32 0.6931472, %v1067_v9  ;;  %v952_v4 = vrot.slane %v941_v60, 7 }
 0x24f   :  { %v1071_v16 = vpop.eup %1070  ;;  %v900_v32 = vmul.f32 0.6931472, %v1069_v61 }
 0x250   :  { %v918_v36 = vmul.f32 0.6931472, %v1071_v16  ;;  %v915_v28 = vsel %vm1561_vm3, %v912_v35, %v909_v22 }
 0x251   :  { %v906_v43 = vsel %vm1565_vm4, %v903_v39, %v900_v32  ;;  %v937_v49 = vadd.f32 %v915_v28, %v853_v42 }
 0x252   :  { %v1073_v27 = vpop.eup %1072  ;;  %v924_v25 = vsel %vm923_vm5, %v921_v24, %v918_v36  ;;  %v936_v53 = vadd.f32 %v906_v43, %v852_v44 }
 0x253   :  { %v925_v62 = vadd.f32 1.0, %v1073_v27  ;;  %v1075_v37 = vpop.eup %1074  ;;  %v928_v40 = vmul.f32 -0.5, %v1073_v27  ;;  %v931_v51 = vand.u32 2147483647, %v1073_v27  ;;  %v938_v7 = vadd.f32 %v924_v25, %v854_v45 }
 0x254   :  { %v882_v29 = vmul.f32 0.6931472, %v1075_v37  ;;  %v943_v10 = vadd.f32 1e-20, %v937_v49  ;;  %v942_v14 = vadd.f32 1e-20, %v936_v53 }
 0x255   :  { %1076 = vlog2.f32 %v925_v62  ;;  %v929_v46 = vadd.f32 1.0, %v928_v40  ;;  %vm932_vm7 = vcmp.lt.f32.partialorder %v931_v51, 0.0004427343  ;;  %v944_v3 = vadd.f32 1e-20, %v938_v7 }
 0x256   :  { %v888_v57 = vsel %vm887_vm6, %v885_v50, %v882_v29  ;;  %v954_v6 = vrot.slane %v943_v10, 5  ;;  %v953_v9 = vrot.slane %v942_v14, 6 }
 0x257   :  { %v930_v59 = vmul.f32 %v1073_v27, %v929_v46  ;;  %v934_v56 = vadd.f32 %v888_v57, %v850_v17  ;;  %v955_v47 = vrot.slane %v944_v3, 4 }
 0x259   :  { %v940_v26 = vadd.f32 1e-20, %v934_v56  ;;  %v962_v61 = vsel %vm961_vm9, %v954_v6, %v955_v47 }
 0x25b   :  { %v1077_v54 = vpop.eup %1076  ;;  %v958_v11 = vsel %vm957_vm8, %v940_v26, %v952_v4 }
 0x25c   :  { %v927_v58 = vmul.f32 0.6931472, %v1077_v54  ;;  %v960_v13 = vsel %vm959_vm10, %v958_v11, %v953_v9 }
 0x25e   :  { %v933_v1 = vsel %vm932_vm7, %v930_v59, %v927_v58 }
 0x25f   :  { %v939_v63 = vadd.f32 %v933_v1, %v855_v0 }
 0x261   :  { %v945_v5 = vadd.f32 1e-20, %v939_v63 }
 0x263   :  { %v956_v55 = vrot.slane %v945_v5, 3 }
 0x265   :  { %v964_v2 = vsel %vm963_vm11, %v962_v61, %v956_v55 }
 0x266   :  { %v966_v15 = vsel %vm965_vm12, %v960_v13, %v964_v2 }
 0x267   :  { %972 = vst.msk [vmem:[#allocation4] sm:$0x3f] %vm970_vm13, %v966_v15 }
 0x268   :  { %983 = dma.vmem_to_hbm [thread:$0]  %s979_s26, 96, %s981_s24, [#allocation5]  }
 0x269   :  { %1102 = dma.done.wait [#allocation5], 96  }
 0x26a   :  { %1103 = vsyncadd [#allocation5], 4294967200 }
 0x26b   :  { %988 = vsyncpa [#allocation5], 1 }

</bundles_post_ra>
